<compile_context>
chip_gen: v7x
topology: tpu7x:2x2x1
jax: 0.10.0
libtpu: 0.0.40
codegen_flags: <defaults>
</compile_context>

<pallas_src>
import functools
import random

import jax
import jax.numpy as jnp
from jax.experimental import pallas as pl
from jax.experimental.pallas import tpu as pltpu

MAX_MIDDLE_REPEATS = 3   # upper bound of random.randint(0, 3) in the PyTorch module
LANE = 128               # padded feature width (lane-dense)
BIAS_STRIDE = 8          # each bias row starts on an 8-sublane-aligned offset


def _dynamic_net_kernel(nrep_ref, x_ref, p_ref, o_ref, *, max_repeats: int, P: int):
    """Fused forward: relu(x@Win+bin) -> n x relu(h@Wmid+bmid) -> h@Wout+bout.

    p_ref layout (rows, all 8-aligned):
      [0      : P    ]  w_in  (padded P x P)
      [P      : 2P   ]  w_mid (padded P x P)
      [2P     : 3P   ]  w_out (padded P x P)
      [3P          ]    b_in  (1 x P)   (rows 3P+1..3P+7 zero)
      [3P + 8      ]    b_mid (1 x P)
      [3P + 16     ]    b_out (1 x P)
    """
    w_in = p_ref[0:P, :]
    w_mid = p_ref[P:2 * P, :]
    w_out = p_ref[2 * P:3 * P, :]
    b_in = p_ref[3 * P:3 * P + 1, :]
    b_mid = p_ref[3 * P + BIAS_STRIDE:3 * P + BIAS_STRIDE + 1, :]
    b_out = p_ref[3 * P + 2 * BIAS_STRIDE:3 * P + 2 * BIAS_STRIDE + 1, :]

    n = nrep_ref[0]

    # Input layer: h = relu(x @ W_in + b_in); h lives in vregs from here on.
    h = jnp.dot(x_ref[...], w_in, preferred_element_type=jnp.float32)
    h = jnp.maximum(h + b_in, 0.0)

    # Middle layer reused a runtime-dynamic number of times (0..max_repeats).
    # Statically unrolled; each application is a value-select on the SMEM scalar,
    # so one executable handles all repeat counts and h never leaves vregs.
    for r in range(max_repeats):
        h_new = jnp.dot(h, w_mid, preferred_element_type=jnp.float32)
        h_new = jnp.maximum(h_new + b_mid, 0.0)
        h = jnp.where(r < n, h_new, h)

    # Output layer (no ReLU); single lane-dense (N_pad, P) store is the only writeback.
    y = jnp.dot(h, w_out, preferred_element_type=jnp.float32) + b_out
    o_ref[...] = y.astype(o_ref.dtype)


def init_linear_params(key, d_in, d_out, dtype=jnp.float32):
    """PyTorch nn.Linear-style init: U(-1/sqrt(d_in), 1/sqrt(d_in)).
    Weight returned pre-transposed as (d_in, d_out); bias as (1, d_out)."""
    kw, kb = jax.random.split(key)
    bound = 1.0 / (d_in ** 0.5)
    w = jax.random.uniform(kw, (d_in, d_out), dtype, minval=-bound, maxval=bound)
    b = jax.random.uniform(kb, (1, d_out), dtype, minval=-bound, maxval=bound)
    return w, b


def pack_params(params, D_in, H, D_out, P=LANE, dtype=jnp.float32):
    """Pack + zero-pad all weights/biases into one (3P + 3*BIAS_STRIDE, P) buffer.

    Zero padding is exact: padded input lanes of x are zero, padded weight rows/cols
    are zero, padded bias lanes are zero, so every padded activation lane stays 0.
    """
    (w_in, b_in), (w_mid, b_mid), (w_out, b_out) = params
    buf = jnp.zeros((3 * P + 3 * BIAS_STRIDE, P), dtype)
    buf = buf.at[0:D_in, 0:H].set(w_in)
    buf = buf.at[P:P + H, 0:H].set(w_mid)
    buf = buf.at[2 * P:2 * P + H, 0:D_out].set(w_out)
    buf = buf.at[3 * P, 0:H].set(b_in.reshape(-1))
    buf = buf.at[3 * P + BIAS_STRIDE, 0:H].set(b_mid.reshape(-1))
    buf = buf.at[3 * P + 2 * BIAS_STRIDE, 0:D_out].set(b_out.reshape(-1))
    return buf


def make_dynamic_net_forward(N, D_in, H, D_out, dtype=jnp.float32,
                             max_repeats=MAX_MIDDLE_REPEATS, P=LANE):
    """Build a jitted forward(x, packed_params, n_repeats) backed by one fused kernel."""
    assert D_in <= P and H <= P and D_out <= P
    N_pad = ((N + 7) // 8) * 8  # sublane-align the batch

    kernel = functools.partial(_dynamic_net_kernel, max_repeats=max_repeats, P=P)
    vmem = pl.BlockSpec(memory_space=pltpu.MemorySpace.VMEM)
    smem = pl.BlockSpec(memory_space=pltpu.MemorySpace.SMEM)

    fused = pl.pallas_call(
        kernel,
        out_shape=jax.ShapeDtypeStruct((N_pad, P), dtype),
        # n_repeats scalar in SMEM; padded x + ONE packed param buffer in VMEM.
        in_specs=[smem, vmem, vmem],
        out_specs=vmem,
    )

    @jax.jit
    def forward(x, packed_params, n_repeats):
        # Clamp to the documented contract (PyTorch draws from 0..max_repeats).
        nrep = jnp.clip(jnp.asarray(n_repeats, jnp.int32), 0, max_repeats).reshape((1,))
        # Lane/sublane-pad x once outside the kernel (exactness preserved by zeros).
        xp = jnp.zeros((N_pad, P), dtype).at[:N, :D_in].set(x)
        y = fused(nrep, xp, packed_params)
        return y[:N, :D_out]

    return forward


def _reference_forward(x, params, n_repeats):
    (w_in, b_in), (w_mid, b_mid), (w_out, b_out) = params
    h = jnp.maximum(x @ w_in + b_in, 0.0)
    for _ in range(n_repeats):
        h = jnp.maximum(h @ w_mid + b_mid, 0.0)
    return h @ w_out + b_out


if __name__ == "__main__":
    # Small shapes consistent with the module: x = randn(N, D_in)
    N, D_in, H, D_out = 8, 16, 32, 8

    key = jax.random.PRNGKey(0)
    k_x, k_in, k_mid, k_out = jax.random.split(key, 4)

    x = jax.random.normal(k_x, (N, D_in), jnp.float32)
    params = (
        init_linear_params(k_in, D_in, H),     # input_linear
        init_linear_params(k_mid, H, H),       # middle_linear (reused)
        init_linear_params(k_out, H, D_out),   # output_linear
    )
    packed = pack_params(params, D_in, H, D_out)   # done once at init time

    forward = make_dynamic_net_forward(N, D_in, H, D_out)

    # One compiled executable serves every repeat count 0..3 — verify all of them.
    for n in range(MAX_MIDDLE_REPEATS + 1):
        y = forward(x, packed, n)
        jax.block_until_ready(y)
        y_ref = _reference_forward(x, params, n)
        assert y.shape == (N, D_out)
        assert jnp.allclose(y, y_ref, atol=1e-5, rtol=1e-5), f"mismatch at n_repeats={n}"

    # "Dynamic graph" behaviour: a random draw of the repeat count at call time
    # (seeded for determinism of this script). No recompilation happens here.
    random.seed(0)
    n_repeats = random.randint(0, 3)
    y_pred = forward(x, packed, n_repeats)
    jax.block_until_ready(y_pred)
    assert jnp.allclose(y_pred, _reference_forward(x, params, n_repeats),
                        atol=1e-5, rtol=1e-5)

    print("KERNEL_OK")
</pallas_src>

<mosaic_0001>
module attributes {stable_mosaic.version = 11 : i64} {
  func.func @_dynamic_net_kernel(%arg0: memref<1xi32, #tpu.memory_space<smem>>, %arg1: memref<8x128xf32, #tpu.memory_space<vmem>>, %arg2: memref<408x128xf32, #tpu.memory_space<vmem>>, %arg3: memref<8x128xf32, #tpu.memory_space<vmem>>) attributes {dimension_semantics = [], scalar_prefetch = 0 : i64, scratch_operands = 0 : i64, tpu.core_type = #tpu.core_type<tc>} {
    %c0 = arith.constant 0 : index
    %c0_0 = arith.constant 0 : index
    %0 = vector.load %arg2[%c0, %c0_0] : memref<408x128xf32, #tpu.memory_space<vmem>>, vector<128x128xf32>
    %c128 = arith.constant 128 : index
    %c0_1 = arith.constant 0 : index
    %1 = vector.load %arg2[%c128, %c0_1] : memref<408x128xf32, #tpu.memory_space<vmem>>, vector<128x128xf32>
    %c256 = arith.constant 256 : index
    %c0_2 = arith.constant 0 : index
    %2 = vector.load %arg2[%c256, %c0_2] : memref<408x128xf32, #tpu.memory_space<vmem>>, vector<128x128xf32>
    %c384 = arith.constant 384 : index
    %c0_3 = arith.constant 0 : index
    %3 = vector.load %arg2[%c384, %c0_3] : memref<408x128xf32, #tpu.memory_space<vmem>>, vector<1x128xf32>
    %c392 = arith.constant 392 : index
    %c0_4 = arith.constant 0 : index
    %4 = vector.load %arg2[%c392, %c0_4] : memref<408x128xf32, #tpu.memory_space<vmem>>, vector<1x128xf32>
    %c400 = arith.constant 400 : index
    %c0_5 = arith.constant 0 : index
    %5 = vector.load %arg2[%c400, %c0_5] : memref<408x128xf32, #tpu.memory_space<vmem>>, vector<1x128xf32>
    %c0_6 = arith.constant 0 : index
    %6 = memref.load %arg0[%c0_6] : memref<1xi32, #tpu.memory_space<smem>>
    %c0_7 = arith.constant 0 : index
    %c0_8 = arith.constant 0 : index
    %7 = vector.load %arg1[%c0_7, %c0_8] : memref<8x128xf32, #tpu.memory_space<vmem>>, vector<8x128xf32>
    %cst = arith.constant dense<0.000000e+00> : vector<8x128xf32>
    %8 = tpu.matmul %7, %0, %cst {dimension_numbers = #tpu.dot_dimension_numbers<[1], [0], [0], [1], [0, 0, 1, 1], [], []>} : vector<8x128xf32>, vector<128x128xf32>, vector<8x128xf32> -> vector<8x128xf32>
    %9 = vector.broadcast %3 : vector<1x128xf32> to vector<8x128xf32>
    %10 = arith.addf %8, %9 : vector<8x128xf32>
    %cst_9 = arith.constant 0.000000e+00 : f32
    %11 = vector.broadcast %cst_9 : f32 to vector<8x128xf32>
    %12 = arith.maximumf %10, %11 : vector<8x128xf32>
    %cst_10 = arith.constant dense<0.000000e+00> : vector<8x128xf32>
    %13 = tpu.matmul %12, %1, %cst_10 {dimension_numbers = #tpu.dot_dimension_numbers<[1], [0], [0], [1], [0, 0, 1, 1], [], []>} : vector<8x128xf32>, vector<128x128xf32>, vector<8x128xf32> -> vector<8x128xf32>
    %14 = vector.broadcast %4 : vector<1x128xf32> to vector<8x128xf32>
    %15 = arith.addf %13, %14 : vector<8x128xf32>
    %cst_11 = arith.constant 0.000000e+00 : f32
    %16 = vector.broadcast %cst_11 : f32 to vector<8x128xf32>
    %17 = arith.maximumf %15, %16 : vector<8x128xf32>
    %c0_i32 = arith.constant 0 : i32
    %18 = arith.cmpi sgt, %6, %c0_i32 : i32
    %19 = arith.select %18, %17, %12 : vector<8x128xf32>
    %cst_12 = arith.constant dense<0.000000e+00> : vector<8x128xf32>
    %20 = tpu.matmul %19, %1, %cst_12 {dimension_numbers = #tpu.dot_dimension_numbers<[1], [0], [0], [1], [0, 0, 1, 1], [], []>} : vector<8x128xf32>, vector<128x128xf32>, vector<8x128xf32> -> vector<8x128xf32>
    %21 = vector.broadcast %4 : vector<1x128xf32> to vector<8x128xf32>
    %22 = arith.addf %20, %21 : vector<8x128xf32>
    %cst_13 = arith.constant 0.000000e+00 : f32
    %23 = vector.broadcast %cst_13 : f32 to vector<8x128xf32>
    %24 = arith.maximumf %22, %23 : vector<8x128xf32>
    %c1_i32 = arith.constant 1 : i32
    %25 = arith.cmpi sgt, %6, %c1_i32 : i32
    %26 = arith.select %25, %24, %19 : vector<8x128xf32>
    %cst_14 = arith.constant dense<0.000000e+00> : vector<8x128xf32>
    %27 = tpu.matmul %26, %1, %cst_14 {dimension_numbers = #tpu.dot_dimension_numbers<[1], [0], [0], [1], [0, 0, 1, 1], [], []>} : vector<8x128xf32>, vector<128x128xf32>, vector<8x128xf32> -> vector<8x128xf32>
    %28 = vector.broadcast %4 : vector<1x128xf32> to vector<8x128xf32>
    %29 = arith.addf %27, %28 : vector<8x128xf32>
    %cst_15 = arith.constant 0.000000e+00 : f32
    %30 = vector.broadcast %cst_15 : f32 to vector<8x128xf32>
    %31 = arith.maximumf %29, %30 : vector<8x128xf32>
    %c2_i32 = arith.constant 2 : i32
    %32 = arith.cmpi sgt, %6, %c2_i32 : i32
    %33 = arith.select %32, %31, %26 : vector<8x128xf32>
    %cst_16 = arith.constant dense<0.000000e+00> : vector<8x128xf32>
    %34 = tpu.matmul %33, %2, %cst_16 {dimension_numbers = #tpu.dot_dimension_numbers<[1], [0], [0], [1], [0, 0, 1, 1], [], []>} : vector<8x128xf32>, vector<128x128xf32>, vector<8x128xf32> -> vector<8x128xf32>
    %35 = vector.broadcast %5 : vector<1x128xf32> to vector<8x128xf32>
    %36 = arith.addf %34, %35 : vector<8x128xf32>
    %c0_17 = arith.constant 0 : index
    %c0_18 = arith.constant 0 : index
    %37 = vector.load %arg3[%c0_17, %c0_18] : memref<8x128xf32, #tpu.memory_space<vmem>>, vector<8x128xf32>
    tpu.vector_store %arg3[%c0_17, %c0_18], %36 {strides = array<i32>} : memref<8x128xf32, #tpu.memory_space<vmem>>, vector<8x128xf32>,
    return
  }
}

</mosaic_0001>

<bundles_post_ra>
// kernel: forward.1
= control target key start
LH: loop header
LB: loop body
LE: loop exit
PB: predicated region body
PF: predicated region fallthrough
CT: control target
= control target key end

     0   :  { %9 = vsyncpa [#allocation4], 0  ;;  %s1056_s0 = inlined_call_operand.<no memory space> [shape: s32[1], index: 0, kind: input, shape index: {}]   ;;  %s1057_s1 = inlined_call_operand.vmem [shape: f32[8,128], index: 1, kind: input, shape index: {}]   ;;  %s1058_s2 = inlined_call_operand.hbm [shape: f32[408,128], index: 2, kind: input, shape index: {}]   ;;  %s1059_s3 = inlined_call_operand.hbm [shape: f32[8,128], index: 3, kind: output, shape index: {}]  }
   0x1   :  { %10 = vsyncpa [#allocation5], 0  ;;  %s918_s12 = smov [#allocation3]   ;;  %s870_s16 = scalar_lea.hbm %s1058_s2, 6528 }
   0x2   :  { %s20_s13 = sshll.u32 %s918_s12, 4  ;;  %p871_p0 = scmp.ne.s32.totalorder %s1058_s2, %s870_s16  ;;  %s21_s13 = int_to_ptr.vmem [resolvable:$true] %s20_s13 }
   0x3   :  { %p874_p1 = scmp.lt.u32.totalorder %s870_s16, %s1058_s2 }
   0x5   :  { %p876_p2 = pnand %p874_p1, %p871_p0 }
   0x7   :  { %879 = shalt.err (!%p876_p2)
}
   0x8   :  { %s880_s21 = scalar_lea.vmem %s21_s13, 6528  ;;  %p885_p4 = scmp.lt.s32.totalorder %s21_s13, %s21_s13 }
   0x9   :  { %p881_p3 = scmp.ne.s32.totalorder %s21_s13, %s880_s21  ;;  %p886_p5 = scmp.lt.s32.totalorder %s880_s21, %s880_s21 }
   0xb   :  { %p887_p6 = por %p886_p5, %p885_p4 }
   0xd   :  { %p888_p7 = pnand %p887_p6, %p881_p3 }
   0xf   :  { %891 = shalt.err (!%p888_p7)
}
  0x10   :  { %s919_s22 = smov 128   ;;  %s920_s23 = smov 8  }
  0x11   :  { %26 = dma.hbm_to_vmem [thread:$0]  %s1058_s2, 6528, %s21_s13, [#allocation4], %s919_s22, %s919_s22, %s920_s23  }
  0x12   :  { %914 = dma.done.wait [#allocation4], 6528  }
  0x13   :  { %915 = vsyncadd [#allocation4], 4294960768  ;;  %v921_v0 = vmov 0.0|0.0   ;;  %vm922_vm0 = vmmov 0   ;;  %v923_v1 = vmov 0.0   ;;  %v30_v2 = vld [vmem:[#allocation3] sm:$0xff] }
  0x14   :  { %743 = vmatprep.subr.bf16.mxu0 %v921_v0  ;;  %600 = vmatprep.mubr.msk.f32.mxu0 %vm922_vm0, %v923_v1  ;;  %v31_v3 = vld [vmem:[#allocation3 + $0x8] sm:$0xff]  ;;  %v32_v4 = vld [vmem:[#allocation3 + $0x10] sm:$0xff]  ;;  %v33_v6 = vld [vmem:[#allocation3 + $0x18] sm:$0xff]  ;;  %p233_p8 = scmp.gt.s32.totalorder %s1056_s0, 0  ;;  %p309_p9 = scmp.gt.s32.totalorder %s1056_s0, 1 }
  0x15   :  { %767 = vmatprep.subr.bf16.mxu1 %v921_v0  ;;  %635 = vmatprep.mubr.msk.f32.mxu1 %vm922_vm0, %v923_v1  ;;  %v744_v5 = vpack.c.bf16 %v31_v3, %v30_v2  ;;  %v747_v7 = vpack.c.bf16 %v33_v6, %v32_v4  ;;  %v34_v8 = vld [vmem:[#allocation3 + $0x20] sm:$0xff]  ;;  %v35_v9 = vld [vmem:[#allocation3 + $0x28] sm:$0xff]  ;;  %v48_v12 = vld [vmem:[#allocation3 + $0x90] sm:$0xff]  ;;  %p385_p10 = scmp.gt.s32.totalorder %s1056_s0, 2  ;;  %s924_s8 = smov [#allocation6]  }
  0x16   :  { %v46_v10 = vld [vmem:[#allocation3 + $0x80] sm:$0xff]  ;;  %v47_v11 = vld [vmem:[#allocation3 + $0x88] sm:$0xff]  ;;  %v49_v13 = vld [vmem:[#allocation3 + $0x98] sm:$0xff]  ;;  %v750_v14 = vpack.c.bf16 %v35_v9, %v34_v8  ;;  %s234_s28 = scalar_select %p233_p8, 1, 0 }
  0x17   :  { %745 = vmatpush3.bf16.msra.mxu0 %v744_v5  ;;  %v964_v15 = vpack.c.bf16 %v47_v11, %v46_v10  ;;  %v36_v16 = vld [vmem:[#allocation3 + $0x30] sm:$0xff]  ;;  %v37_v17 = vld [vmem:[#allocation3 + $0x38] sm:$0xff]  ;;  %v968_v18 = vpack.c.bf16 %v49_v13, %v48_v12  ;;  %v50_v19 = vld [vmem:[#allocation3 + $0xa0] sm:$0xff]  ;;  %s310_s4 = scalar_select %p309_p9, 1, 0 }
  0x18   :  { %746 = vmatprep.subr.bf16.mxu0 %v921_v0  ;;  %v51_v20 = vld [vmem:[#allocation3 + $0xa8] sm:$0xff]  ;;  %v753_v21 = vpack.c.bf16 %v37_v17, %v36_v16  ;;  %v38_v22 = vld [vmem:[#allocation3 + $0x40] sm:$0xff]  ;;  %v52_v25 = vld [vmem:[#allocation3 + $0xb0] sm:$0xff]  ;;  %v235_v57 = vstv %s234_s28  ;;  %s386_s7 = scalar_select %p385_p10, 1, 0 }
  0x19   :  { %769 = vmatpush3.bf16.msra.mxu1 %v964_v15  ;;  %v39_v23 = vld [vmem:[#allocation3 + $0x48] sm:$0xff]  ;;  %v973_v24 = vpack.c.bf16 %v51_v20, %v50_v19  ;;  %v53_v26 = vld [vmem:[#allocation3 + $0xb8] sm:$0xff]  ;;  %v40_v28 = vld [vmem:[#allocation3 + $0x50] sm:$0xff]  ;;  %vm236_vm1 = vcmp.eq.s32.totalorder %v235_v57, 1  ;;  %s471_s9 = sshll.u32 %s924_s8, 4  ;;  %s472_s9 = int_to_ptr.vmem [resolvable:$true] %s471_s9 }
  0x1a   :  { %770 = vmatprep.subr.bf16.mxu1 %v921_v0  ;;  %v756_v27 = vpack.c.bf16 %v39_v23, %v38_v22  ;;  %v41_v29 = vld [vmem:[#allocation3 + $0x58] sm:$0xff]  ;;  %v978_v30 = vpack.c.bf16 %v53_v26, %v52_v25  ;;  %v54_v31 = vld [vmem:[#allocation3 + $0xc0] sm:$0xff]  ;;  %v55_v32 = vld [vmem:[#allocation3 + $0xc8] sm:$0xff]  ;;  %s892_s10 = scalar_lea.vmem %s472_s9, 128  ;;  %p897_p12 = scmp.lt.s32.totalorder %s472_s9, %s472_s9 }
  0x1b   :  { %748 = vmatpush3.bf16.msra.mxu0 %v747_v7  ;;  %v759_v33 = vpack.c.bf16 %v41_v29, %v40_v28  ;;  %v42_v34 = vld [vmem:[#allocation3 + $0x60] sm:$0xff]  ;;  %v43_v35 = vld [vmem:[#allocation3 + $0x68] sm:$0xff]  ;;  %v780_v36 = vpack.c.bf16 %v55_v32, %v54_v31  ;;  %v56_v37 = vld [vmem:[#allocation3 + $0xd0] sm:$0xff]  ;;  %p893_p11 = scmp.ne.s32.totalorder %s472_s9, %s892_s10  ;;  %p898_p13 = scmp.lt.s32.totalorder %s892_s10, %s892_s10 }
  0x1c   :  { %749 = vmatprep.subr.bf16.mxu0 %v921_v0  ;;  %v57_v38 = vld [vmem:[#allocation3 + $0xd8] sm:$0xff]  ;;  %v762_v39 = vpack.c.bf16 %v43_v35, %v42_v34  ;;  %v44_v40 = vld [vmem:[#allocation3 + $0x70] sm:$0xff]  ;;  %v58_v43 = vld [vmem:[#allocation3 + $0xe0] sm:$0xff] }
  0x1d   :  { %772 = vmatpush3.bf16.msra.mxu1 %v968_v18  ;;  %v45_v41 = vld [vmem:[#allocation3 + $0x78] sm:$0xff]  ;;  %v783_v42 = vpack.c.bf16 %v57_v38, %v56_v37  ;;  %v59_v44 = vld [vmem:[#allocation3 + $0xe8] sm:$0xff]  ;;  %v82_v47 = vld [vmem:[%s1057_s1] sm:$0xff]  ;;  %p899_p0 = por %p898_p13, %p897_p12 }
  0x1e   :  { %773 = vmatprep.subr.bf16.mxu1 %v921_v0  ;;  %v765_v45 = vpack.c.bf16 %v45_v41, %v44_v40  ;;  %v786_v46 = vpack.c.bf16 %v59_v44, %v58_v43  ;;  %v60_v48 = vld [vmem:[#allocation3 + $0xf0] sm:$0xff]  ;;  %v61_v49 = vld [vmem:[#allocation3 + $0xf8] sm:$0xff]  ;;  %v480_v51 = vld [vmem:[#allocation3 + $0x180] ss:$0 sm:$0xff] }
  0x1f   :  { %751 = vmatpush3.bf16.msra.mxu0 %v750_v14  ;;  %v789_v50 = vpack.c.bf16 %v61_v49, %v60_v48  ;;  %v1024_v56 = vld [vmem:[#allocation3 + $0x188] ss:$0 sm:$0xff]  ;;  %v62_v63 = vld [vmem:[#allocation3 + $0x100] sm:$0xff]  ;;  %v64_v3 = vld [vmem:[#allocation3 + $0x110] sm:$0xff]  ;;  %p900_p1 = pnand %p899_p0, %p893_p11 }
  0x20   :  { %752 = vmatprep.subr.bf16.mxu0 %v921_v0  ;;  %v63_v2 = vld [vmem:[#allocation3 + $0x108] sm:$0xff]  ;;  %v65_v5 = vld [vmem:[#allocation3 + $0x118] sm:$0xff]  ;;  %v66_v7 = vld [vmem:[#allocation3 + $0x120] sm:$0xff] }
  0x21   :  { %775 = vmatpush3.bf16.msra.mxu1 %v973_v24  ;;  %v840_v4 = vpack.c.bf16 %v63_v2, %v62_v63  ;;  %v843_v6 = vpack.c.bf16 %v65_v5, %v64_v3  ;;  %v67_v8 = vld [vmem:[#allocation3 + $0x128] sm:$0xff]  ;;  %v68_v10 = vld [vmem:[#allocation3 + $0x130] sm:$0xff]  ;;  %v69_v11 = vld [vmem:[#allocation3 + $0x138] sm:$0xff] }
  0x22   :  { %776 = vmatprep.subr.bf16.mxu1 %v921_v0  ;;  %v846_v9 = vpack.c.bf16 %v67_v8, %v66_v7  ;;  %v849_v12 = vpack.c.bf16 %v69_v11, %v68_v10  ;;  %v71_v13 = vld [vmem:[#allocation3 + $0x148] sm:$0xff]  ;;  %v73_v16 = vld [vmem:[#allocation3 + $0x158] sm:$0xff]  ;;  %v482_v35 = vld [vmem:[#allocation3 + $0x190] ss:$0 sm:$0xff] }
  0x23   :  { %754 = vmatpush3.bf16.msra.mxu0 %v753_v21  ;;  %v75_v19 = vld [vmem:[#allocation3 + $0x168] sm:$0xff]  ;;  %v311_v21 = vstv %s310_s4  ;;  %v77_v28 = vld [vmem:[#allocation3 + $0x178] sm:$0xff] }
  0x24   :  { %755 = vmatprep.subr.bf16.mxu0 %v921_v0  ;;  %vm312_vm2 = vcmp.eq.s32.totalorder %v311_v21, 1 }
  0x25   :  { %778 = vmatpush3.bf16.msra.mxu1 %v978_v30 }
  0x26   :  { %779 = vmatprep.subr.bf16.mxu1 %v921_v0 }
  0x27   :  { %757 = vmatpush3.bf16.msra.mxu0 %v756_v27  ;;  %v76_v27 = vld [vmem:[#allocation3 + $0x170] sm:$0xff] }
  0x28   :  { %758 = vmatprep.subr.bf16.mxu0 %v921_v0  ;;  %v861_v29 = vpack.c.bf16 %v77_v28, %v76_v27 }
  0x29   :  { %781 = vmatpush3.bf16.msra.mxu1 %v780_v36 }
  0x2a   :  { %782 = vmatprep.subr.bf16.mxu1 %v921_v0 }
  0x2b   :  { %760 = vmatpush3.bf16.msra.mxu0 %v759_v33 }
  0x2c   :  { %761 = vmatprep.subr.bf16.mxu0 %v921_v0 }
  0x2d   :  { %784 = vmatpush3.bf16.msra.mxu1 %v783_v42 }
  0x2e   :  { %785 = vmatprep.subr.bf16.mxu1 %v921_v0 }
  0x2f   :  { %763 = vmatpush3.bf16.msra.mxu0 %v762_v39 }
  0x30   :  { %764 = vmatprep.subr.bf16.mxu0 %v921_v0 }
  0x31   :  { %787 = vmatpush3.bf16.msra.mxu1 %v786_v46 }
  0x32   :  { %788 = vmatprep.subr.bf16.mxu1 %v921_v0 }
  0x33   :  { %766 = vmatpush3.bf16.msra.mxu0 %v765_v45 }
  0x34   :  { %791 = vmatprep.subr.bf16.mxu0 %v921_v0 }
  0x35   :  { %790 = vmatpush3.bf16.msra.mxu1 %v789_v50 }
  0x36   :  { %601 = vmatmul.mubr.f32.vlgmr.msra.gmra.mrb[0].mxu0 %v82_v47  ;;  %815 = vmatprep.subr.bf16.mxu1 %v921_v0 }
  0x37   :  { %793 = vmatpush3.bf16.msra.mxu0 %v964_v15  ;;  %670 = vmatprep.mubr.msk.f32.mxu0 %vm922_vm0, %v923_v1 }
  0x38   :  { %794 = vmatprep.subr.bf16.mxu0 %v921_v0 }
  0x3b   :  { %796 = vmatpush3.bf16.msra.mxu0 %v968_v18 }
  0x3c   :  { %797 = vmatprep.subr.bf16.mxu0 %v921_v0 }
  0x3f   :  { %799 = vmatpush3.bf16.msra.mxu0 %v973_v24 }
  0x40   :  { %800 = vmatprep.subr.bf16.mxu0 %v921_v0 }
  0x43   :  { %802 = vmatpush3.bf16.msra.mxu0 %v978_v30 }
  0x44   :  { %803 = vmatprep.subr.bf16.mxu0 %v921_v0 }
  0x47   :  { %805 = vmatpush3.bf16.msra.mxu0 %v780_v36 }
  0x48   :  { %806 = vmatprep.subr.bf16.mxu0 %v921_v0 }
  0x4b   :  { %808 = vmatpush3.bf16.msra.mxu0 %v783_v42 }
  0x4c   :  { %809 = vmatprep.subr.bf16.mxu0 %v921_v0 }
  0x4f   :  { %811 = vmatpush3.bf16.msra.mxu0 %v786_v46 }
  0x50   :  { %812 = vmatprep.subr.bf16.mxu0 %v921_v0 }
  0x53   :  { %814 = vmatpush3.bf16.msra.mxu0 %v789_v50 }
  0x54   :  { %839 = vmatprep.subr.bf16.mxu0 %v921_v0 }
 0x109   :  { %v153_v52 = vpop.f32.mrb[0].mxu0 }
 0x10a   :  { %v154_v53 = vadd.f32 %v480_v51, %v153_v52  ;;  %v602_v54 = vpop.f32.mrb[1].mxu0 }
 0x10c   :  { %v157_v55 = vmax.f32 %v154_v53, 0.0 }
 0x10e   :  { %636 = vmatmul.mubr.f32.vlgmr.msra.gmra.mrb[0].mxu1 %v157_v55 }
 0x10f   :  { %817 = vmatpush3.bf16.msra.mxu1 %v964_v15  ;;  %705 = vmatprep.mubr.msk.f32.mxu1 %vm922_vm0, %v923_v1  ;;  %v72_v15 = vld [vmem:[#allocation3 + $0x150] sm:$0xff] }
 0x110   :  { %818 = vmatprep.subr.bf16.mxu1 %v921_v0  ;;  %v855_v17 = vpack.c.bf16 %v73_v16, %v72_v15 }
 0x113   :  { %820 = vmatpush3.bf16.msra.mxu1 %v968_v18  ;;  %v74_v18 = vld [vmem:[#allocation3 + $0x160] sm:$0xff] }
 0x114   :  { %821 = vmatprep.subr.bf16.mxu1 %v921_v0  ;;  %v858_v20 = vpack.c.bf16 %v75_v19, %v74_v18 }
 0x117   :  { %823 = vmatpush3.bf16.msra.mxu1 %v973_v24 }
 0x118   :  { %824 = vmatprep.subr.bf16.mxu1 %v921_v0 }
 0x11b   :  { %826 = vmatpush3.bf16.msra.mxu1 %v978_v30 }
 0x11c   :  { %827 = vmatprep.subr.bf16.mxu1 %v921_v0 }
 0x11f   :  { %829 = vmatpush3.bf16.msra.mxu1 %v780_v36 }
 0x120   :  { %830 = vmatprep.subr.bf16.mxu1 %v921_v0 }
 0x123   :  { %832 = vmatpush3.bf16.msra.mxu1 %v783_v42 }
 0x124   :  { %833 = vmatprep.subr.bf16.mxu1 %v921_v0 }
 0x127   :  { %835 = vmatpush3.bf16.msra.mxu1 %v786_v46 }
 0x128   :  { %836 = vmatprep.subr.bf16.mxu1 %v921_v0 }
 0x12b   :  { %838 = vmatpush3.bf16.msra.mxu1 %v789_v50 }
 0x1e1   :  { %v228_v58 = vpop.f32.mrb[0].mxu1 }
 0x1e2   :  { %v229_v59 = vadd.f32 %v1024_v56, %v228_v58  ;;  %v637_v60 = vpop.f32.mrb[1].mxu1 }
 0x1e4   :  { %v232_v61 = vmax.f32 %v229_v59, 0.0 }
 0x1e6   :  { %v237_v62 = vsel %vm236_vm1, %v232_v61, %v157_v55 }
 0x1e7   :  { %671 = vmatmul.mubr.f32.vlgmr.msra.gmra.mrb[2].mxu0 %v237_v62 }
 0x1e8   :  { %740 = vmatprep.mubr.msk.f32.mxu0 %vm922_vm0, %v923_v1  ;;  %841 = vmatpush3.bf16.msra.mxu0 %v840_v4  ;;  %v70_v1 = vld [vmem:[#allocation3 + $0x140] sm:$0xff] }
 0x1e9   :  { %842 = vmatprep.subr.bf16.mxu0 %v921_v0  ;;  %v852_v14 = vpack.c.bf16 %v71_v13, %v70_v1 }
 0x1ec   :  { %844 = vmatpush3.bf16.msra.mxu0 %v843_v6 }
 0x1ed   :  { %845 = vmatprep.subr.bf16.mxu0 %v921_v0 }
 0x1f0   :  { %847 = vmatpush3.bf16.msra.mxu0 %v846_v9 }
 0x1f1   :  { %848 = vmatprep.subr.bf16.mxu0 %v921_v0 }
 0x1f4   :  { %850 = vmatpush3.bf16.msra.mxu0 %v849_v12 }
 0x1f5   :  { %851 = vmatprep.subr.bf16.mxu0 %v921_v0 }
 0x1f8   :  { %853 = vmatpush3.bf16.msra.mxu0 %v852_v14 }
 0x1f9   :  { %854 = vmatprep.subr.bf16.mxu0 %v921_v0 }
 0x1fc   :  { %856 = vmatpush3.bf16.msra.mxu0 %v855_v17 }
 0x1fd   :  { %857 = vmatprep.subr.bf16.mxu0 %v921_v0 }
 0x200   :  { %859 = vmatpush3.bf16.msra.mxu0 %v858_v20 }
 0x201   :  { %860 = vmatprep.subr.bf16.mxu0 %v921_v0  ;;  %v387_v0 = vstv %s386_s7 }
 0x202   :  { %vm388_vm3 = vcmp.eq.s32.totalorder %v387_v0, 1 }
 0x204   :  { %862 = vmatpush3.bf16.msra.mxu0 %v861_v29 }
 0x2ba   :  { %v304_v22 = vpop.f32.mrb[2].mxu0 }
 0x2bb   :  { %v305_v23 = vadd.f32 %v1024_v56, %v304_v22  ;;  %v672_v24 = vpop.f32.mrb[3].mxu0 }
 0x2bd   :  { %v308_v25 = vmax.f32 %v305_v23, 0.0 }
 0x2bf   :  { %v313_v26 = vsel %vm312_vm2, %v308_v25, %v237_v62 }
 0x2c0   :  { %706 = vmatmul.mubr.f32.vlgmr.msra.gmra.mrb[2].mxu1 %v313_v26 }
 0x393   :  { %v380_v30 = vpop.f32.mrb[2].mxu1 }
 0x394   :  { %v381_v31 = vadd.f32 %v1024_v56, %v380_v30  ;;  %v707_v32 = vpop.f32.mrb[3].mxu1 }
 0x396   :  { %v384_v33 = vmax.f32 %v381_v31, 0.0 }
 0x398   :  { %v389_v34 = vsel %vm388_vm3, %v384_v33, %v313_v26 }
 0x399   :  { %741 = vmatmul.mubr.f32.vlgmr.msra.gmra.mrb[4].mxu0 %v389_v34 }
 0x46c   :  { %v460_v36 = vpop.f32.mrb[4].mxu0 }
 0x46d   :  { %v461_v37 = vadd.f32 %v482_v35, %v460_v36  ;;  %v742_v38 = vpop.f32.mrb[5].mxu0 }
 0x46f   :  { %464 = vst [vmem:[#allocation6] sm:$0xff] %v461_v37 }
 0x470   :  { %903 = shalt.err (!%p900_p1)
}
 0x471   :  { %s904_s12 = scalar_lea.hbm %s1059_s3, 128 }
 0x472   :  { %p905_p2 = scmp.ne.s32.totalorder %s1059_s3, %s904_s12  ;;  %p908_p3 = scmp.lt.u32.totalorder %s904_s12, %s1059_s3 }
 0x474   :  { %p910_p4 = pnand %p908_p3, %p905_p2 }
 0x476   :  { %913 = shalt.err (!%p910_p4)
}
 0x477   :  { %474 = dma.vmem_to_hbm [thread:$0]  %s472_s9, 128, %s1059_s3, [#allocation5]  }
 0x478   :  { %916 = dma.done.wait [#allocation5], 128  }
 0x479   :  { %917 = vsyncadd [#allocation5], 4294967168 }
 0x47a   :  { %478 = vsyncpa [#allocation4], 1 }
 0x47b   :  { %479 = vsyncpa [#allocation5], 1 }

</bundles_post_ra>
